<compile_context>
chip_gen: v7x
topology: tpu7x:2x2x1
jax: 0.10.0
libtpu: 0.0.40
codegen_flags: <defaults>
</compile_context>

<pallas_src>
import functools
import itertools

import jax
import jax.numpy as jnp
import numpy as np
from jax.experimental import pallas as pl
from jax.experimental.pallas import tpu as pltpu

_LANE = 128


def _round_up(x, m):
    return (x + m - 1) // m * m


def _level_col_consts(stride, grid_w, scales, ratios, anchor_scale):
    """Per-column constants for the lane-dense (grid_h, grid_w*4*A) layout.

    Column j = ix*(4*A) + a*4 + coord, coord in [y1, x1, y2, x2].  With
        out[r, j] = a_col[j] * r + b_col[j]
    a_col[j] is `stride` for y-coordinates (which scale with the row index)
    and 0 for x-coordinates; b_col[j] folds the half-pixel offset, the x grid
    center and the signed half anchor extent.
    """
    num_anchors = len(scales) * len(ratios)
    nbase = num_anchors * 4
    is_y = np.zeros((nbase,), np.float64)
    off = np.zeros((nbase,), np.float64)
    for a, (scale, ratio) in enumerate(itertools.product(scales, ratios)):
        base_anchor_size = anchor_scale * stride * scale
        anchor_size_x_2 = base_anchor_size * ratio[0] / 2.0
        anchor_size_y_2 = base_anchor_size * ratio[1] / 2.0
        is_y[a * 4 + 0] = 1.0
        off[a * 4 + 0] = -anchor_size_y_2
        is_y[a * 4 + 1] = 0.0
        off[a * 4 + 1] = -anchor_size_x_2
        is_y[a * 4 + 2] = 1.0
        off[a * 4 + 2] = +anchor_size_y_2
        is_y[a * 4 + 3] = 0.0
        off[a * 4 + 3] = +anchor_size_x_2

    ix = np.arange(grid_w, dtype=np.float64)[:, None]        # (grid_w, 1)
    xv = (ix + 0.5) * stride                                  # (grid_w, 1)
    a_col = np.broadcast_to(is_y * float(stride), (grid_w, nbase))
    b_col = is_y * (0.5 * stride) + (1.0 - is_y) * xv + off   # (grid_w, nbase)
    return (a_col.reshape(-1).astype(np.float32),
            b_col.reshape(-1).astype(np.float32))


def _anchors_kernel(const_ref, *out_refs, level_dims):
    """All pyramid levels in one kernel invocation.

    const_ref: (2*num_levels, max_cols_pad) f32; row 2l holds a_col and row
    2l+1 holds b_col for level l (zero padded past the level's true width).
    out_refs[l]: (grid_h_l, cols_pad_l) lane-dense anchor block for level l.

    Per level the body is one broadcast multiply-add:
        out[r, j] = a_col[j] * r + b_col[j]
    with r only materialised as a (grid_h, 1) column (no full-tile iota and
    no per-output-vreg int->float convert).
    """
    for l, (grid_h, _, cols_pad) in enumerate(level_dims):
        a = const_ref[2 * l:2 * l + 1, :cols_pad]            # (1, cols_pad)
        b = const_ref[2 * l + 1:2 * l + 2, :cols_pad]        # (1, cols_pad)
        r = jax.lax.broadcasted_iota(jnp.int32, (grid_h, 1), 0)
        r = r.astype(jnp.float32)                            # (grid_h, 1)
        out_refs[l][...] = (a * r + b).astype(out_refs[l].dtype)


def _build_anchors(img_h, img_w, anchor_scale, strides, scales, ratios, dtype):
    """Runs the Pallas kernel once for this configuration; returns (1, N, 4)."""
    num_anchors = len(scales) * len(ratios)

    level_dims = []        # (grid_h, cols, cols_pad); cols = grid_w * A * 4
    a_cols, b_cols = [], []
    for stride in strides:
        if img_w % stride != 0:
            raise ValueError('input size must be divided by the stride.')
        # Match the reference np.arange grids exactly (height is NOT required
        # to divide the stride in the reference; avoid // truncation).
        grid_w = len(np.arange(stride / 2.0, img_w, stride))
        grid_h = len(np.arange(stride / 2.0, img_h, stride))
        if grid_h == 0 or grid_w == 0:
            continue  # level contributes no anchors
        a_col, b_col = _level_col_consts(stride, grid_w, scales, ratios,
                                         anchor_scale)
        cols = grid_w * num_anchors * 4
        cols_pad = _round_up(cols, _LANE)      # full-lane (unmasked) stores
        level_dims.append((grid_h, cols, cols_pad))
        a_cols.append(a_col)
        b_cols.append(b_col)

    if not level_dims:
        return jnp.zeros((1, 0, 4), dtype=dtype)

    num_levels = len(level_dims)
    max_cols_pad = max(cp for _, _, cp in level_dims)
    const_all = np.zeros((2 * num_levels, max_cols_pad), np.float32)
    for l, (_, cols, _) in enumerate(level_dims):
        const_all[2 * l, :cols] = a_cols[l]
        const_all[2 * l + 1, :cols] = b_cols[l]

    # Write the requested dtype straight from the kernel when TPU-friendly
    # (f32 / bf16); otherwise compute f32 and cast once in the wrapper.
    req_dtype = jnp.dtype(dtype)
    out_dtype = req_dtype if req_dtype in (jnp.dtype(jnp.float32),
                                           jnp.dtype(jnp.bfloat16)) \
        else jnp.dtype(jnp.float32)

    kernel = functools.partial(_anchors_kernel, level_dims=tuple(level_dims))
    out_shape = tuple(jax.ShapeDtypeStruct((gh, cp), out_dtype)
                      for gh, _, cp in level_dims)
    out_specs = tuple(pl.BlockSpec((gh, cp), lambda i: (0, 0))
                      for gh, _, cp in level_dims)
    in_spec = pl.BlockSpec((2 * num_levels, max_cols_pad), lambda i: (0, 0))

    # Everything is fully resident with grid=(1,). Only raise the scoped-VMEM
    # cap when the image-size-dependent footprint might not fit the default.
    out_bytes = sum(gh * cp * out_dtype.itemsize for gh, _, cp in level_dims)
    in_bytes = const_all.size * 4
    needed = 2 * (out_bytes + in_bytes) + (1 << 20)
    cparams = dict(dimension_semantics=("arbitrary",))
    if needed > (16 << 20):
        cparams["vmem_limit_bytes"] = int(min(needed, 100 << 20))

    outs = pl.pallas_call(
        kernel,
        out_shape=out_shape,
        grid=(1,),
        in_specs=[in_spec],
        out_specs=out_specs,
        compiler_params=pltpu.CompilerParams(**cparams),
    )(jnp.asarray(const_all))

    # Drop the lane pad, then (grid_h, cols) -> (grid_h*grid_w*A, 4); the
    # row-major reshape reproduces the reference concat/reshape ordering
    # (cell-major, then anchor = product(scales, ratios), then [y1,x1,y2,x2]).
    boxes_all = [o[:, :cols].reshape(-1, 4)
                 for o, (_, cols, _) in zip(outs, level_dims)]
    anchor_boxes = jnp.concatenate(boxes_all, axis=0)
    if anchor_boxes.dtype != req_dtype:
        anchor_boxes = anchor_boxes.astype(req_dtype)
    return jax.block_until_ready(anchor_boxes[None])  # (1, N, 4)


_ANCHOR_CACHE = {}


def anchors_forward(
    image,
    anchor_scale=4.0,
    pyramid_levels=(3, 4, 5, 6, 7),
    strides=None,
    scales=None,
    ratios=None,
    dtype=jnp.float32,
):
    """JAX/Pallas equivalent of Anchors.forward. Returns (1, N, 4).

    The result only depends on the image shape and the anchor hyper-params,
    so it is cached (reference's `last_anchors` behaviour): repeat calls do
    no host work, no H2D transfer and no kernel launch.
    """
    if strides is None:
        strides = tuple(2 ** x for x in pyramid_levels)
    if scales is None:
        scales = (2 ** 0, 2 ** (1.0 / 3.0), 2 ** (2.0 / 3.0))
    if ratios is None:
        ratios = ((1.0, 1.0), (1.4, 0.7), (0.7, 1.4))

    img_h, img_w = int(image.shape[2]), int(image.shape[3])
    key = (img_h, img_w, float(anchor_scale), tuple(int(s) for s in strides),
           tuple(float(s) for s in scales),
           tuple((float(r[0]), float(r[1])) for r in ratios),
           jnp.dtype(dtype).name)
    cached = _ANCHOR_CACHE.get(key)
    if cached is not None:
        return cached
    # TODO(synk): the reference additionally keys its cache on the torch
    # device; under jit / explicit sharding the caller controls placement.
    result = _build_anchors(img_h, img_w, float(anchor_scale),
                            [int(s) for s in strides],
                            [float(s) for s in scales],
                            [(float(r[0]), float(r[1])) for r in ratios],
                            dtype)
    _ANCHOR_CACHE[key] = result
    return result


def _numpy_reference(image_shape, anchor_scale=4.0, pyramid_levels=(3, 4, 5, 6, 7)):
    """Direct port of the PyTorch/numpy reference for validation."""
    strides = [2 ** x for x in pyramid_levels]
    scales = np.array([2 ** 0, 2 ** (1.0 / 3.0), 2 ** (2.0 / 3.0)])
    ratios = [(1.0, 1.0), (1.4, 0.7), (0.7, 1.4)]
    boxes_all = []
    for stride in strides:
        boxes_level = []
        for scale, ratio in itertools.product(scales, ratios):
            base_anchor_size = anchor_scale * stride * scale
            anchor_size_x_2 = base_anchor_size * ratio[0] / 2.0
            anchor_size_y_2 = base_anchor_size * ratio[1] / 2.0
            x = np.arange(stride / 2, image_shape[1], stride)
            y = np.arange(stride / 2, image_shape[0], stride)
            xv, yv = np.meshgrid(x, y)
            xv = xv.reshape(-1)
            yv = yv.reshape(-1)
            boxes = np.vstack(
                (yv - anchor_size_y_2, xv - anchor_size_x_2,
                 yv + anchor_size_y_2, xv + anchor_size_x_2)
            )
            boxes = np.swapaxes(boxes, 0, 1)
            boxes_level.append(np.expand_dims(boxes, axis=1))
        boxes_level = np.concatenate(boxes_level, axis=1)
        boxes_all.append(boxes_level.reshape([-1, 4]))
    return np.vstack(boxes_all).astype(np.float32)[None]


if __name__ == "__main__":
    key = jax.random.PRNGKey(0)
    # Image size must be divisible by the largest stride (2**7 = 128).
    image = jax.random.normal(key, (2, 4, 128, 128), dtype=jnp.float32)

    out = anchors_forward(image)
    out = jax.block_until_ready(out)

    # Second call must hit the shape-keyed cache (reference `last_anchors`).
    out2 = anchors_forward(image)
    assert out2 is out

    ref = _numpy_reference((128, 128))
    assert out.shape == ref.shape, (out.shape, ref.shape)
    np.testing.assert_allclose(np.asarray(out), ref, rtol=1e-5, atol=1e-3)

    print("KERNEL_OK")
</pallas_src>

<mosaic_0001>
module attributes {stable_mosaic.version = 11 : i64} {
  func.func @_anchors_kernel(%arg0: i32, %arg1: memref<10x640xf32, #tpu.memory_space<vmem>>, %arg2: memref<16x640xf32, #tpu.memory_space<vmem>>, %arg3: memref<8x384xf32, #tpu.memory_space<vmem>>, %arg4: memref<4x256xf32, #tpu.memory_space<vmem>>, %arg5: memref<2x128xf32, #tpu.memory_space<vmem>>, %arg6: memref<1x128xf32, #tpu.memory_space<vmem>>) attributes {dimension_semantics = [#tpu.dimension_semantics<arbitrary>], iteration_bounds = array<i64: 1>, scalar_prefetch = 0 : i64, scratch_operands = 0 : i64, tpu.core_type = #tpu.core_type<tc>, window_params = [{pipeline_mode = #tpu.pipeline_mode<synchronous>, transform_indices = @transform_0, window_bounds = array<i64: 10, 640>}, {pipeline_mode = #tpu.pipeline_mode<synchronous>, transform_indices = @transform_1, window_bounds = array<i64: 16, 640>}, {pipeline_mode = #tpu.pipeline_mode<synchronous>, transform_indices = @transform_2, window_bounds = array<i64: 8, 384>}, {pipeline_mode = #tpu.pipeline_mode<synchronous>, transform_indices = @transform_3, window_bounds = array<i64: 4, 256>}, {pipeline_mode = #tpu.pipeline_mode<synchronous>, transform_indices = @transform_4, window_bounds = array<i64: 2, 128>}, {pipeline_mode = #tpu.pipeline_mode<synchronous>, transform_indices = @transform_5, window_bounds = array<i64: 1, 128>}]} {
    %c0 = arith.constant 0 : index
    %c0_0 = arith.constant 0 : index
    %0 = vector.load %arg1[%c0, %c0_0] : memref<10x640xf32, #tpu.memory_space<vmem>>, vector<1x640xf32>
    %c1 = arith.constant 1 : index
    %c0_1 = arith.constant 0 : index
    %1 = vector.load %arg1[%c1, %c0_1] : memref<10x640xf32, #tpu.memory_space<vmem>>, vector<1x640xf32>
    %2 = tpu.iota {dimensions = array<i32: 0>} : vector<16x1xi32>
    %3 = arith.sitofp %2 : vector<16x1xi32> to vector<16x1xf32>
    %4 = vector.broadcast %0 : vector<1x640xf32> to vector<16x640xf32>
    %5 = vector.broadcast %3 : vector<16x1xf32> to vector<16x640xf32>
    %6 = arith.mulf %4, %5 : vector<16x640xf32>
    %7 = vector.broadcast %1 : vector<1x640xf32> to vector<16x640xf32>
    %8 = arith.addf %6, %7 : vector<16x640xf32>
    %c0_2 = arith.constant 0 : index
    %c0_3 = arith.constant 0 : index
    %9 = vector.load %arg2[%c0_2, %c0_3] : memref<16x640xf32, #tpu.memory_space<vmem>>, vector<16x640xf32>
    tpu.vector_store %arg2[%c0_2, %c0_3], %8 {strides = array<i32>} : memref<16x640xf32, #tpu.memory_space<vmem>>, vector<16x640xf32>,
    %c2 = arith.constant 2 : index
    %c0_4 = arith.constant 0 : index
    %10 = vector.load %arg1[%c2, %c0_4] : memref<10x640xf32, #tpu.memory_space<vmem>>, vector<1x384xf32>
    %c3 = arith.constant 3 : index
    %c0_5 = arith.constant 0 : index
    %11 = vector.load %arg1[%c3, %c0_5] : memref<10x640xf32, #tpu.memory_space<vmem>>, vector<1x384xf32>
    %12 = tpu.iota {dimensions = array<i32: 0>} : vector<8x1xi32>
    %13 = arith.sitofp %12 : vector<8x1xi32> to vector<8x1xf32>
    %14 = vector.broadcast %10 : vector<1x384xf32> to vector<8x384xf32>
    %15 = vector.broadcast %13 : vector<8x1xf32> to vector<8x384xf32>
    %16 = arith.mulf %14, %15 : vector<8x384xf32>
    %17 = vector.broadcast %11 : vector<1x384xf32> to vector<8x384xf32>
    %18 = arith.addf %16, %17 : vector<8x384xf32>
    %c0_6 = arith.constant 0 : index
    %c0_7 = arith.constant 0 : index
    %19 = vector.load %arg3[%c0_6, %c0_7] : memref<8x384xf32, #tpu.memory_space<vmem>>, vector<8x384xf32>
    tpu.vector_store %arg3[%c0_6, %c0_7], %18 {strides = array<i32>} : memref<8x384xf32, #tpu.memory_space<vmem>>, vector<8x384xf32>,
    %c4 = arith.constant 4 : index
    %c0_8 = arith.constant 0 : index
    %20 = vector.load %arg1[%c4, %c0_8] : memref<10x640xf32, #tpu.memory_space<vmem>>, vector<1x256xf32>
    %c5 = arith.constant 5 : index
    %c0_9 = arith.constant 0 : index
    %21 = vector.load %arg1[%c5, %c0_9] : memref<10x640xf32, #tpu.memory_space<vmem>>, vector<1x256xf32>
    %22 = tpu.iota {dimensions = array<i32: 0>} : vector<4x1xi32>
    %23 = arith.sitofp %22 : vector<4x1xi32> to vector<4x1xf32>
    %24 = vector.broadcast %20 : vector<1x256xf32> to vector<4x256xf32>
    %25 = vector.broadcast %23 : vector<4x1xf32> to vector<4x256xf32>
    %26 = arith.mulf %24, %25 : vector<4x256xf32>
    %27 = vector.broadcast %21 : vector<1x256xf32> to vector<4x256xf32>
    %28 = arith.addf %26, %27 : vector<4x256xf32>
    %c0_10 = arith.constant 0 : index
    %c0_11 = arith.constant 0 : index
    %29 = vector.load %arg4[%c0_10, %c0_11] : memref<4x256xf32, #tpu.memory_space<vmem>>, vector<4x256xf32>
    tpu.vector_store %arg4[%c0_10, %c0_11], %28 {strides = array<i32>} : memref<4x256xf32, #tpu.memory_space<vmem>>, vector<4x256xf32>,
    %c6 = arith.constant 6 : index
    %c0_12 = arith.constant 0 : index
    %30 = vector.load %arg1[%c6, %c0_12] : memref<10x640xf32, #tpu.memory_space<vmem>>, vector<1x128xf32>
    %c7 = arith.constant 7 : index
    %c0_13 = arith.constant 0 : index
    %31 = vector.load %arg1[%c7, %c0_13] : memref<10x640xf32, #tpu.memory_space<vmem>>, vector<1x128xf32>
    %32 = tpu.iota {dimensions = array<i32: 0>} : vector<2x1xi32>
    %33 = arith.sitofp %32 : vector<2x1xi32> to vector<2x1xf32>
    %34 = vector.broadcast %30 : vector<1x128xf32> to vector<2x128xf32>
    %35 = vector.broadcast %33 : vector<2x1xf32> to vector<2x128xf32>
    %36 = arith.mulf %34, %35 : vector<2x128xf32>
    %37 = vector.broadcast %31 : vector<1x128xf32> to vector<2x128xf32>
    %38 = arith.addf %36, %37 : vector<2x128xf32>
    %c0_14 = arith.constant 0 : index
    %c0_15 = arith.constant 0 : index
    %39 = vector.load %arg5[%c0_14, %c0_15] : memref<2x128xf32, #tpu.memory_space<vmem>>, vector<2x128xf32>
    tpu.vector_store %arg5[%c0_14, %c0_15], %38 {strides = array<i32>} : memref<2x128xf32, #tpu.memory_space<vmem>>, vector<2x128xf32>,
    %c8 = arith.constant 8 : index
    %c0_16 = arith.constant 0 : index
    %40 = vector.load %arg1[%c8, %c0_16] : memref<10x640xf32, #tpu.memory_space<vmem>>, vector<1x128xf32>
    %c9 = arith.constant 9 : index
    %c0_17 = arith.constant 0 : index
    %41 = vector.load %arg1[%c9, %c0_17] : memref<10x640xf32, #tpu.memory_space<vmem>>, vector<1x128xf32>
    %42 = tpu.iota {dimensions = array<i32: 0>} : vector<1x1xi32>
    %43 = arith.sitofp %42 : vector<1x1xi32> to vector<1x1xf32>
    %44 = vector.broadcast %43 : vector<1x1xf32> to vector<1x128xf32>
    %45 = arith.mulf %40, %44 : vector<1x128xf32>
    %46 = arith.addf %45, %41 : vector<1x128xf32>
    %c0_18 = arith.constant 0 : index
    %c0_19 = arith.constant 0 : index
    %47 = vector.load %arg6[%c0_18, %c0_19] : memref<1x128xf32, #tpu.memory_space<vmem>>, vector<1x128xf32>
    tpu.vector_store %arg6[%c0_18, %c0_19], %46 {strides = array<i32>} : memref<1x128xf32, #tpu.memory_space<vmem>>, vector<1x128xf32>,
    return
  }
  func.func @transform_0(%arg0: i32) -> (i32, i32) {
    %c0_i32 = arith.constant 0 : i32
    %c0_i32_0 = arith.constant 0 : i32
    %c0_i32_1 = arith.constant 0 : i32
    return %c0_i32, %c0_i32_0 : i32, i32
  }
  func.func @transform_1(%arg0: i32) -> (i32, i32) {
    %c0_i32 = arith.constant 0 : i32
    %c0_i32_0 = arith.constant 0 : i32
    %c0_i32_1 = arith.constant 0 : i32
    return %c0_i32, %c0_i32_0 : i32, i32
  }
  func.func @transform_2(%arg0: i32) -> (i32, i32) {
    %c0_i32 = arith.constant 0 : i32
    %c0_i32_0 = arith.constant 0 : i32
    %c0_i32_1 = arith.constant 0 : i32
    return %c0_i32, %c0_i32_0 : i32, i32
  }
  func.func @transform_3(%arg0: i32) -> (i32, i32) {
    %c0_i32 = arith.constant 0 : i32
    %c0_i32_0 = arith.constant 0 : i32
    %c0_i32_1 = arith.constant 0 : i32
    return %c0_i32, %c0_i32_0 : i32, i32
  }
  func.func @transform_4(%arg0: i32) -> (i32, i32) {
    %c0_i32 = arith.constant 0 : i32
    %c0_i32_0 = arith.constant 0 : i32
    %c0_i32_1 = arith.constant 0 : i32
    return %c0_i32, %c0_i32_0 : i32, i32
  }
  func.func @transform_5(%arg0: i32) -> (i32, i32) {
    %c0_i32 = arith.constant 0 : i32
    %c0_i32_0 = arith.constant 0 : i32
    %c0_i32_1 = arith.constant 0 : i32
    return %c0_i32, %c0_i32_0 : i32, i32
  }
}

</mosaic_0001>

<bundles_post_ra>
// kernel: tpu_custom_call.1
= control target key start
LH: loop header
LB: loop body
LE: loop exit
PB: predicated region body
PF: predicated region fallthrough
CT: control target
= control target key end

     0   :  { %11 = vsyncpa [#allocation3], 0  ;;  %s645_s0 = inlined_call_operand.hbm [shape: f32[10,640], index: 0, kind: input, shape index: {}]   ;;  %s646_s1 = inlined_call_operand.hbm [shape: f32[16,640], index: 1, kind: output, shape index: {0}]   ;;  %s647_s2 = inlined_call_operand.hbm [shape: f32[8,384], index: 2, kind: output, shape index: {1}]   ;;  %s648_s3 = inlined_call_operand.hbm [shape: f32[4,256], index: 3, kind: output, shape index: {2}]   ;;  %s649_s4 = inlined_call_operand.hbm [shape: f32[2,128], index: 4, kind: output, shape index: {3}]   ;;  %s650_s5 = inlined_call_operand.hbm [shape: f32[1,128], index: 5, kind: output, shape index: {4}]  }
   0x1   :  { %12 = vsyncpa [#allocation4], 0 }
   0x2   :  { %13 = vsyncpa [#allocation7], 0 }
   0x3   :  { %14 = vsyncpa [#allocation10], 0  ;;  %s433_s18 = smov [#allocation2]   ;;  %s293_s22 = scalar_lea.hbm %s645_s0, 1280 }
   0x4   :  { %s20_s19 = sshll.u32 %s433_s18, 4  ;;  %p294_p0 = scmp.ne.s32.totalorder %s645_s0, %s293_s22  ;;  %s21_s19 = int_to_ptr.vmem [resolvable:$true] %s20_s19 }
   0x5   :  { %p297_p1 = scmp.lt.u32.totalorder %s293_s22, %s645_s0 }
   0x7   :  { %p299_p2 = pnand %p297_p1, %p294_p0 }
   0x9   :  { %302 = shalt.err (!%p299_p2)
}
   0xa   :  { %s303_s27 = scalar_lea.vmem %s21_s19, 1280  ;;  %p308_p4 = scmp.lt.s32.totalorder %s21_s19, %s21_s19 }
   0xb   :  { %p304_p3 = scmp.ne.s32.totalorder %s21_s19, %s303_s27  ;;  %p309_p5 = scmp.lt.s32.totalorder %s303_s27, %s303_s27 }
   0xd   :  { %p310_p6 = por %p309_p5, %p308_p4 }
   0xf   :  { %p311_p7 = pnand %p310_p6, %p304_p3 }
  0x11   :  { %314 = shalt.err (!%p311_p7)
}
  0x12   :  { %s434_s28 = smov 640   ;;  %s435_s29 = smov 40  }
  0x13   :  { %26 = dma.hbm_to_vmem [thread:$0]  %s645_s0, 1280, %s21_s19, [#allocation3], %s434_s28, %s434_s28, %s435_s29  }
  0x14   :  { %425 = dma.done.wait [#allocation3], 1280  }
  0x15   :  { %426 = vsyncadd [#allocation3], 4294966016  ;;  %v37_v0 = vlaneseq  ;;  %s436_s0 = smov [#allocation6]   ;;  %s437_s8 = smov [#allocation9]   ;;  %v204_v15 = vld [vmem:[#allocation2 + $0x6] ss:$0 sm:$0xff] }
  0x16   :  { %s501_s7 = sshll.u32 %s436_s0, 4  ;;  %s252_s9 = sshll.u32 %s437_s8, 4  ;;  %v125_v9 = vld [vmem:[#allocation2 + $0x2] ss:$8 sm:$0x7]  ;;  %s516_s9 = int_to_ptr.vmem [resolvable:$true] %s252_s9  ;;  %s525_s7 = int_to_ptr.vmem [resolvable:$true] %s501_s7 }
  0x17   :  { %v486_v1 = vshrl.u32 %v37_v0, 7  ;;  %v127_v10 = vld [vmem:[#allocation2 + $0x3] ss:$8 sm:$0x7]  ;;  %v205_v16 = vld [vmem:[#allocation2 + $0x7] ss:$0 sm:$0xff]  ;;  %p320_p9 = scmp.lt.s32.totalorder %s516_s9, %s516_s9 }
  0x18   :  { %v209_v17 = vld [vmem:[#allocation2 + $0x28] ss:$0 sm:$0xff]  ;;  %v31_v22 = vld [vmem:[#allocation2] ss:$8 sm:$0x10]  ;;  %s315_s10 = scalar_lea.vmem %s516_s9, 32 }
  0x19   :  { %v489_v2 = vsub.s32 0, %v486_v1  ;;  %v492_v3 = vsub.s32 1, %v486_v1  ;;  %v495_v4 = vcvt.s32.f32 %v486_v1  ;;  %v53_v5 = vsub.s32 2, %v486_v1  ;;  %v30_v21 = vld [vmem:[#allocation2] ss:$8 sm:$0xf]  ;;  %p316_p8 = scmp.ne.s32.totalorder %s516_s9, %s315_s10  ;;  %p321_p10 = scmp.lt.s32.totalorder %s315_s10, %s315_s10 }
  0x1a   :  { %v57_v6 = vsub.s32 3, %v486_v1  ;;  %v61_v7 = vsub.s32 4, %v486_v1  ;;  %v39_v8 = vadd.s32 8, %v486_v1  ;;  %v32_v25 = vor.u32 %v31_v22, %v30_v21  ;;  %v34_v26 = vld [vmem:[#allocation2 + $0x1] ss:$8 sm:$0xf] }
  0x1b   :  { %v132_v11 = vrot.slane %v125_v9, %v489_v2  ;;  %v151_v12 = vrot.slane %v127_v10, %v489_v2  ;;  %v136_v13 = vrot.slane %v125_v9, %v492_v3  ;;  %v155_v14 = vrot.slane %v127_v10, %v492_v3  ;;  %v35_v27 = vld [vmem:[#allocation2 + $0x1] ss:$8 sm:$0x10]  ;;  %p322_p11 = por %p321_p10, %p320_p9 }
  0x1c   :  { %v140_v18 = vrot.slane %v125_v9, %v53_v5  ;;  %v159_v19 = vrot.slane %v127_v10, %v53_v5  ;;  %v206_v20 = vmul.f32 %v204_v15, %v495_v4  ;;  %v510_v28 = vcvt.s32.f32 %v39_v8 }
  0x1d   :  { %v144_v23 = vmul.f32 %v132_v11, %v495_v4  ;;  %v145_v24 = vmul.f32 %v136_v13, %v495_v4  ;;  %v36_v31 = vor.u32 %v35_v27, %v34_v26  ;;  %v514_v32 = vmul.f32 %v209_v17, %v495_v4  ;;  %p323_p12 = pnand %p322_p11, %p316_p8 }
  0x1e   :  { %v146_v29 = vmul.f32 %v140_v18, %v495_v4  ;;  %v207_v30 = vadd.f32 %v206_v20, %v205_v16  ;;  %v46_v35 = vrot.slane %v32_v25, %v489_v2  ;;  %v50_v36 = vrot.slane %v32_v25, %v492_v3 }
  0x1f   :  { %v163_v33 = vadd.f32 %v151_v12, %v144_v23  ;;  %v164_v34 = vadd.f32 %v155_v14, %v145_v24  ;;  %v82_v38 = vrot.slane %v36_v31, %v489_v2  ;;  %v522_v39 = vrot.slane %v36_v31, %v492_v3 }
  0x20   :  { %v165_v37 = vadd.f32 %v159_v19, %v146_v29  ;;  %208 = vst [vmem:[#allocation9] sm:$0x3] %v207_v30  ;;  %v54_v40 = vrot.slane %v32_v25, %v53_v5  ;;  %v68_v41 = vmul.f32 %v46_v35, %v495_v4  ;;  %v69_v42 = vmul.f32 %v50_v36, %v495_v4 }
  0x21   :  { %166 = vst [vmem:[#allocation6] sm:$0xff] %v163_v33  ;;  %167 = vst [vmem:[#allocation6 + $0x8] sm:$0xff] %v164_v34  ;;  %v90_v43 = vrot.slane %v36_v31, %v53_v5  ;;  %v58_v44 = vrot.slane %v32_v25, %v57_v6 }
  0x22   :  { %326 = shalt.err (!%p323_p12)
}
  0x23   :  { %s327_s13 = scalar_lea.hbm %s649_s4, 32 }
  0x24   :  { %p328_p13 = scmp.ne.s32.totalorder %s649_s4, %s327_s13  ;;  %p331_p0 = scmp.lt.u32.totalorder %s327_s13, %s649_s4 }
  0x26   :  { %p333_p1 = pnand %p331_p0, %p328_p13 }
  0x28   :  { %336 = shalt.err (!%p333_p1)
}
  0x29   :  { %255 = dma.vmem_to_hbm [thread:$0]  %s516_s9, 32, %s649_s4, [#allocation10]   ;;  %168 = vst [vmem:[#allocation6 + $0x10] sm:$0xff] %v165_v37  ;;  %v70_v45 = vmul.f32 %v54_v40, %v495_v4  ;;  %v94_v46 = vrot.slane %v36_v31, %v57_v6  ;;  %v62_v47 = vrot.slane %v32_v25, %v61_v7  ;;  %v98_v48 = vrot.slane %v36_v31, %v61_v7  ;;  %v170_v53 = vld [vmem:[#allocation2 + $0x4] ss:$8 sm:$0x3] }
  0x2a   :  { %v104_v49 = vadd.f32 %v82_v38, %v68_v41  ;;  %v105_v50 = vadd.f32 %v522_v39, %v69_v42  ;;  %v71_v51 = vmul.f32 %v58_v44, %v495_v4  ;;  %v73_v52 = vmul.f32 %v46_v35, %v510_v28  ;;  %s337_s4 = scalar_lea.vmem %s525_s7, 384  ;;  %p342_p3 = scmp.lt.s32.totalorder %s525_s7, %s525_s7 }
  0x2b   :  { %p338_p2 = scmp.ne.s32.totalorder %s525_s7, %s337_s4  ;;  %p343_p4 = scmp.lt.s32.totalorder %s337_s4, %s337_s4 }
  0x2d   :  { %p344_p5 = por %p343_p4, %p342_p3 }
  0x2f   :  { %p345_p6 = pnand %p344_p5, %p338_p2 }
  0x31   :  { %348 = shalt.err (!%p345_p6)
}
  0x32   :  { %s349_s22 = scalar_lea.hbm %s647_s2, 384 }
  0x33   :  { %p350_p7 = scmp.ne.s32.totalorder %s647_s2, %s349_s22  ;;  %p353_p8 = scmp.lt.u32.totalorder %s349_s22, %s647_s2 }
  0x35   :  { %p355_p9 = pnand %p353_p8, %p350_p7 }
  0x37   :  { %358 = shalt.err (!%p355_p9)
}
  0x38   :  { %235 = dma.vmem_to_hbm [thread:$0]  %s525_s7, 384, %s647_s2, [#allocation7]   ;;  %v106_v54 = vadd.f32 %v90_v43, %v70_v45  ;;  %v72_v55 = vmul.f32 %v62_v47, %v495_v4  ;;  %v74_v56 = vmul.f32 %v50_v36, %v510_v28  ;;  %v75_v57 = vmul.f32 %v54_v40, %v510_v28  ;;  %v172_v58 = vld [vmem:[#allocation2 + $0x5] ss:$8 sm:$0x3]  ;;  %114 = vst [vmem:[#allocation5] sm:$0xff] %v104_v49 }
  0x39   :  { %s438_s6 = smov [#allocation5]   ;;  %115 = vst [vmem:[#allocation5 + $0x8] sm:$0xff] %v105_v50  ;;  %v107_v59 = vadd.f32 %v94_v46, %v71_v51  ;;  %v109_v60 = vadd.f32 %v82_v38, %v73_v52  ;;  %v76_v61 = vmul.f32 %v58_v44, %v510_v28  ;;  %v77_v62 = vmul.f32 %v62_v47, %v510_v28  ;;  %v210_v63 = vld [vmem:[#allocation2 + $0x29] ss:$0 sm:$0xff]  ;;  %s439_s2 = smov [#allocation11]  }
  0x3a   :  { %s219_s0 = sshll.u32 %s438_s6, 4  ;;  %s262_s7 = sshll.u32 %s439_s2, 4  ;;  %116 = vst [vmem:[#allocation5 + $0x10] sm:$0xff] %v106_v54  ;;  %v108_v0 = vadd.f32 %v98_v48, %v72_v55  ;;  %v110_v1 = vadd.f32 %v522_v39, %v74_v56  ;;  %v111_v5 = vadd.f32 %v90_v43, %v75_v57  ;;  %v177_v6 = vrot.slane %v170_v53, %v489_v2  ;;  %s584_s0 = int_to_ptr.vmem [resolvable:$true] %s219_s0  ;;  %s589_s7 = int_to_ptr.vmem [resolvable:$true] %s262_s7 }
  0x3b   :  { %117 = vst [vmem:[#allocation5 + $0x18] sm:$0xff] %v107_v59  ;;  %119 = vst [vmem:[#allocation5 + $0x28] sm:$0xff] %v109_v60  ;;  %v112_v7 = vadd.f32 %v94_v46, %v76_v61  ;;  %v113_v8 = vadd.f32 %v98_v48, %v77_v62  ;;  %v181_v9 = vrot.slane %v170_v53, %v492_v3  ;;  %s440_s8 = smov [#allocation8]   ;;  %s359_s10 = scalar_lea.vmem %s584_s0, 1280 }
  0x3c   :  { %v190_v10 = vrot.slane %v172_v58, %v489_v2  ;;  %118 = vst [vmem:[#allocation5 + $0x20] sm:$0xff] %v108_v0  ;;  %120 = vst [vmem:[#allocation5 + $0x30] sm:$0xff] %v110_v1  ;;  %v184_v11 = vmul.f32 %v177_v6, %v495_v4  ;;  %v194_v12 = vrot.slane %v172_v58, %v492_v3  ;;  %s592_s9 = sshll.u32 %s440_s8, 4  ;;  %p360_p10 = scmp.ne.s32.totalorder %s584_s0, %s359_s10  ;;  %s243_s9 = int_to_ptr.vmem [resolvable:$true] %s592_s9 }
  0x3d   :  { %121 = vst [vmem:[#allocation5 + $0x38] sm:$0xff] %v111_v5  ;;  %v212_v13 = vadd.f32 %v514_v32, %v210_v63  ;;  %122 = vst [vmem:[#allocation5 + $0x40] sm:$0xff] %v112_v7  ;;  %v185_v2 = vmul.f32 %v181_v9, %v495_v4  ;;  %p364_p11 = scmp.lt.s32.totalorder %s584_s0, %s584_s0  ;;  %p365_p12 = scmp.lt.s32.totalorder %s359_s10, %s359_s10 }
  0x3e   :  { %123 = vst [vmem:[#allocation5 + $0x48] sm:$0xff] %v113_v8  ;;  %v197_v14 = vadd.f32 %v190_v10, %v184_v11 }
  0x3f   :  { %213 = vst [vmem:[#allocation11] sm:$0x1] %v212_v13  ;;  %p366_p13 = por %p365_p12, %p364_p11 }
  0x41   :  { %p367_p0 = pnand %p366_p13, %p360_p10 }
  0x43   :  { %370 = shalt.err (!%p367_p0)
}
  0x44   :  { %s371_s13 = scalar_lea.hbm %s646_s1, 1280 }
  0x45   :  { %p372_p1 = scmp.ne.s32.totalorder %s646_s1, %s371_s13  ;;  %p375_p2 = scmp.lt.u32.totalorder %s371_s13, %s646_s1 }
  0x47   :  { %p377_p3 = pnand %p375_p2, %p372_p1 }
  0x49   :  { %380 = shalt.err (!%p377_p3)
}
  0x4a   :  { %225 = dma.vmem_to_hbm [thread:$0]  %s584_s0, 1280, %s646_s1, [#allocation4], %s434_s28, %s434_s28, %s435_s29   ;;  %v198_v3 = vadd.f32 %v194_v12, %v185_v2 }
  0x4b   :  { %s381_s4 = scalar_lea.vmem %s589_s7, 16  ;;  %s385_s20 = scalar_lea.vmem %s589_s7, 32 }
  0x4c   :  { %p382_p4 = scmp.ne.s32.totalorder %s589_s7, %s381_s4  ;;  %p386_p5 = scmp.lt.s32.totalorder %s589_s7, %s589_s7 }
  0x4d   :  { %p387_p6 = scmp.lt.s32.totalorder %s385_s20, %s381_s4 }
  0x4f   :  { %p388_p7 = por %p387_p6, %p386_p5 }
  0x51   :  { %p389_p8 = pnand %p388_p7, %p382_p4 }
  0x53   :  { %392 = shalt.err (!%p389_p8)
}
  0x54   :  { %s393_s23 = scalar_lea.hbm %s650_s5, 16 }
  0x55   :  { %p394_p9 = scmp.ne.s32.totalorder %s650_s5, %s393_s23  ;;  %p397_p10 = scmp.lt.u32.totalorder %s393_s23, %s650_s5 }
  0x57   :  { %p399_p11 = pnand %p397_p10, %p394_p9 }
  0x59   :  { %402 = shalt.err (!%p399_p11)
}
  0x5a   :  { %265 = dma.vmem_to_hbm [thread:$0]  %s589_s7, 16, %s650_s5, [#allocation10]   ;;  %v201_v4 = vcombine.low %v197_v14, %v198_v3 }
  0x5b   :  { %s403_s27 = scalar_lea.vmem %s243_s9, 128  ;;  %p408_p13 = scmp.lt.s32.totalorder %s243_s9, %s243_s9 }
  0x5c   :  { %203 = vst [vmem:[#allocation8] sm:$0xff] %v201_v4  ;;  %p404_p12 = scmp.ne.s32.totalorder %s243_s9, %s403_s27  ;;  %p409_p0 = scmp.lt.s32.totalorder %s403_s27, %s403_s27 }
  0x5e   :  { %p410_p1 = por %p409_p0, %p408_p13 }
  0x60   :  { %p411_p2 = pnand %p410_p1, %p404_p12 }
  0x62   :  { %414 = shalt.err (!%p411_p2)
}
  0x63   :  { %s415_s0 = scalar_lea.hbm %s648_s3, 128 }
  0x64   :  { %p416_p3 = scmp.ne.s32.totalorder %s648_s3, %s415_s0  ;;  %p419_p4 = scmp.lt.u32.totalorder %s415_s0, %s648_s3 }
  0x66   :  { %p421_p5 = pnand %p419_p4, %p416_p3 }
  0x68   :  { %424 = shalt.err (!%p421_p5)
}
  0x69   :  { %245 = dma.vmem_to_hbm [thread:$0]  %s243_s9, 128, %s648_s3, [#allocation7]  }
  0x6a   :  { %427 = dma.done.wait [#allocation4], 1280  }
  0x6b   :  { %428 = vsyncadd [#allocation4], 4294966016 }
  0x6c   :  { %429 = dma.done.wait [#allocation7], 512  }
  0x6d   :  { %430 = vsyncadd [#allocation7], 4294966784 }
  0x6e   :  { %431 = dma.done.wait [#allocation10], 48  }
  0x6f   :  { %432 = vsyncadd [#allocation10], 4294967248 }
  0x70   :  { %281 = vsyncpa [#allocation3], 1 }
  0x71   :  { %282 = vsyncpa [#allocation4], 1 }
  0x72   :  { %283 = vsyncpa [#allocation7], 1 }
  0x73   :  { %284 = vsyncpa [#allocation10], 1 }

</bundles_post_ra>
